<compile_context>
chip_gen: v6e
topology: v6e:2x2x1
jax: 0.10.0
libtpu: 0.0.40
codegen_flags: <defaults>
</compile_context>

<pallas_src>
import jax
import jax.numpy as jnp
from jax.experimental import pallas as pl
from jax.experimental.pallas import tpu as pltpu


def actor_kernel(x_ref, w1_ref, b1_ref, w2_ref, b2_ref, w3_ref, b3_ref, o_ref):
    wdt = w1_ref.dtype  # bf16 when use_bf16=True, else f32

    x = x_ref[...]

    # fc1 + ReLU (f32 accumulation, re-cast activations to MXU input dtype)
    h1 = jnp.dot(x, w1_ref[...], preferred_element_type=jnp.float32) + b1_ref[...]
    h1 = jnp.maximum(h1, 0.0).astype(wdt)

    # fc2 + ReLU
    h2 = jnp.dot(h1, w2_ref[...], preferred_element_type=jnp.float32) + b2_ref[...]
    h2 = jnp.maximum(h2, 0.0).astype(wdt)

    # fc3 logits (f32)
    logits = jnp.dot(h2, w3_ref[...], preferred_element_type=jnp.float32) + b3_ref[...]

    # Numerically stable softmax over dim=1; reciprocal goes to the EUP slot.
    m = jnp.max(logits, axis=1, keepdims=True)
    e = jnp.exp(logits - m)
    denom = jnp.sum(e, axis=1, keepdims=True)
    o_ref[...] = (e * pl.reciprocal(denom, approx=False)).astype(o_ref.dtype)


def _round_up(n, m):
    return ((n + m - 1) // m) * m


def actor_forward(x, w1, b1, w2, b2, w3, b3, *, block_b=512, use_bf16=True):
    B, in_dim = x.shape
    f1 = w1.shape[1]
    f2 = w2.shape[1]
    n_act = w3.shape[1]

    if use_bf16:
        x = x.astype(jnp.bfloat16)
        w1, w2, w3 = (w.astype(jnp.bfloat16) for w in (w1, w2, w3))
    b1, b2, b3 = (b.astype(jnp.float32) for b in (b1, b2, b3))

    # Batch tile: multiple of 8 sublanes; capped so tiny batches use one tile.
    TB = min(block_b, _round_up(B, 8))
    grid = (pl.cdiv(B, TB),)

    def batch_tiled(feat):
        # feature dims (16/32/8) equal the full array dim -> valid block shapes
        return pl.BlockSpec((TB, feat), lambda i: (i, 0))

    def resident(shape):
        # same block index for every grid step -> weights stay VMEM-resident
        return pl.BlockSpec(shape, lambda i: (0, 0))

    return pl.pallas_call(
        actor_kernel,
        out_shape=jax.ShapeDtypeStruct((B, n_act), jnp.float32),
        grid=grid,
        in_specs=[
            batch_tiled(in_dim),
            resident((in_dim, f1)), resident((1, f1)),
            resident((f1, f2)), resident((1, f2)),
            resident((f2, n_act)), resident((1, n_act)),
        ],
        out_specs=batch_tiled(n_act),
        compiler_params=pltpu.CompilerParams(
            dimension_semantics=("parallel",),  # megacore sharding on v7x
        ),
    )(x, w1, b1, w2, b2, w3, b3)


def init_actor_params(key, input_dim, fc1_dims, fc2_dims, n_actions):
    """Deterministic init mimicking PyTorch nn.Linear defaults (uniform +-1/sqrt(fan_in)).
    Weights stored already transposed: [in, out]; biases [1, out]."""
    def linear(k, fan_in, fan_out):
        kw, kb = jax.random.split(k)
        bound = 1.0 / jnp.sqrt(fan_in)
        w = jax.random.uniform(kw, (fan_in, fan_out), jnp.float32, -bound, bound)
        b = jax.random.uniform(kb, (1, fan_out), jnp.float32, -bound, bound)
        return w, b

    k1, k2, k3 = jax.random.split(key, 3)
    w1, b1 = linear(k1, input_dim, fc1_dims)
    w2, b2 = linear(k2, fc1_dims, fc2_dims)
    w3, b3 = linear(k3, fc2_dims, n_actions)
    return w1, b1, w2, b2, w3, b3


def actor_forward_ref(x, w1, b1, w2, b2, w3, b3, *, cast_bf16=True):
    """Pure-JAX reference; cast_bf16=True mirrors the kernel's mixed precision."""
    dt = jnp.bfloat16 if cast_bf16 else jnp.float32

    def lin(a, w, b):
        return jnp.dot(a.astype(dt), w.astype(dt),
                       preferred_element_type=jnp.float32) + b.astype(jnp.float32)

    h1 = jax.nn.relu(lin(x, w1, b1))
    h2 = jax.nn.relu(lin(h1, w2, b2))
    return jax.nn.softmax(lin(h2, w3, b3), axis=1)


if __name__ == "__main__":
    # Shapes consistent with Actor(input_dims=(16,), fc1=32, fc2=32, n_actions=8)
    input_dim, fc1_dims, fc2_dims, n_actions = 16, 32, 32, 8

    key = jax.random.PRNGKey(0)
    kx, kp, kx2 = jax.random.split(key, 3)
    params = init_actor_params(kp, input_dim, fc1_dims, fc2_dims, n_actions)

    # --- Small batch (single grid step) ---
    batch = 8
    x = jax.random.normal(kx, (batch, input_dim), dtype=jnp.float32)
    out = jax.block_until_ready(actor_forward(x, *params))

    ref_bf16 = actor_forward_ref(x, *params, cast_bf16=True)
    ref_f32 = actor_forward_ref(x, *params, cast_bf16=False)
    assert out.shape == (batch, n_actions)
    assert jnp.allclose(out, ref_bf16, atol=2e-3, rtol=2e-3), "mismatch vs bf16 reference"
    assert jnp.allclose(out, ref_f32, atol=2e-2, rtol=2e-2), "mismatch vs f32 reference"
    assert jnp.allclose(jnp.sum(out, axis=1), 1.0, atol=1e-5)

    # --- Larger batch exercising the batch grid (TB=512 -> grid=(2,)) ---
    big_batch = 1024
    x_big = jax.random.normal(kx2, (big_batch, input_dim), dtype=jnp.float32)
    out_big = jax.block_until_ready(actor_forward(x_big, *params))

    ref_big = actor_forward_ref(x_big, *params, cast_bf16=True)
    assert out_big.shape == (big_batch, n_actions)
    assert jnp.allclose(out_big, ref_big, atol=2e-3, rtol=2e-3), "mismatch (batched grid)"
    assert jnp.allclose(jnp.sum(out_big, axis=1), 1.0, atol=1e-5)

    print("KERNEL_OK")
</pallas_src>

<mosaic_0001>
module attributes {stable_mosaic.version = 11 : i64} {
  func.func @actor_kernel(%arg0: i32, %arg1: memref<8x16xbf16, #tpu.memory_space<vmem>>, %arg2: memref<16x32xbf16, #tpu.memory_space<vmem>>, %arg3: memref<1x32xf32, #tpu.memory_space<vmem>>, %arg4: memref<32x32xbf16, #tpu.memory_space<vmem>>, %arg5: memref<1x32xf32, #tpu.memory_space<vmem>>, %arg6: memref<32x8xbf16, #tpu.memory_space<vmem>>, %arg7: memref<1x8xf32, #tpu.memory_space<vmem>>, %arg8: memref<8x8xf32, #tpu.memory_space<vmem>>) attributes {dimension_semantics = [#tpu.dimension_semantics<parallel>], iteration_bounds = array<i64: 1>, scalar_prefetch = 0 : i64, scratch_operands = 0 : i64, tpu.core_type = #tpu.core_type<tc>, window_params = [{transform_indices = @transform_0, window_bounds = array<i64: 8, 16>}, {pipeline_mode = #tpu.pipeline_mode<synchronous>, transform_indices = @transform_1, window_bounds = array<i64: 16, 32>}, {pipeline_mode = #tpu.pipeline_mode<synchronous>, transform_indices = @transform_2, window_bounds = array<i64: 1, 32>}, {pipeline_mode = #tpu.pipeline_mode<synchronous>, transform_indices = @transform_3, window_bounds = array<i64: 32, 32>}, {pipeline_mode = #tpu.pipeline_mode<synchronous>, transform_indices = @transform_4, window_bounds = array<i64: 1, 32>}, {pipeline_mode = #tpu.pipeline_mode<synchronous>, transform_indices = @transform_5, window_bounds = array<i64: 32, 8>}, {pipeline_mode = #tpu.pipeline_mode<synchronous>, transform_indices = @transform_6, window_bounds = array<i64: 1, 8>}, {transform_indices = @transform_7, window_bounds = array<i64: 8, 8>}]} {
    %c0 = arith.constant 0 : index
    %c0_0 = arith.constant 0 : index
    %0 = vector.load %arg1[%c0, %c0_0] : memref<8x16xbf16, #tpu.memory_space<vmem>>, vector<8x16xbf16>
    %c0_1 = arith.constant 0 : index
    %c0_2 = arith.constant 0 : index
    %1 = vector.load %arg2[%c0_1, %c0_2] : memref<16x32xbf16, #tpu.memory_space<vmem>>, vector<16x32xbf16>
    %cst = arith.constant dense<0.000000e+00> : vector<8x32xf32>
    %2 = tpu.matmul %0, %1, %cst {dimension_numbers = #tpu.dot_dimension_numbers<[1], [0], [0], [1], [0, 0, 1, 1], [], []>} : vector<8x16xbf16>, vector<16x32xbf16>, vector<8x32xf32> -> vector<8x32xf32>
    %c0_3 = arith.constant 0 : index
    %c0_4 = arith.constant 0 : index
    %3 = vector.load %arg3[%c0_3, %c0_4] : memref<1x32xf32, #tpu.memory_space<vmem>>, vector<1x32xf32>
    %4 = vector.broadcast %3 : vector<1x32xf32> to vector<8x32xf32>
    %5 = arith.addf %2, %4 : vector<8x32xf32>
    %cst_5 = arith.constant 0.000000e+00 : f32
    %6 = vector.broadcast %cst_5 : f32 to vector<8x32xf32>
    %7 = arith.maximumf %5, %6 : vector<8x32xf32>
    %8 = arith.truncf %7 : vector<8x32xf32> to vector<8x32xbf16>
    %c0_6 = arith.constant 0 : index
    %c0_7 = arith.constant 0 : index
    %9 = vector.load %arg4[%c0_6, %c0_7] : memref<32x32xbf16, #tpu.memory_space<vmem>>, vector<32x32xbf16>
    %cst_8 = arith.constant dense<0.000000e+00> : vector<8x32xf32>
    %10 = tpu.matmul %8, %9, %cst_8 {dimension_numbers = #tpu.dot_dimension_numbers<[1], [0], [0], [1], [0, 0, 1, 1], [], []>} : vector<8x32xbf16>, vector<32x32xbf16>, vector<8x32xf32> -> vector<8x32xf32>
    %c0_9 = arith.constant 0 : index
    %c0_10 = arith.constant 0 : index
    %11 = vector.load %arg5[%c0_9, %c0_10] : memref<1x32xf32, #tpu.memory_space<vmem>>, vector<1x32xf32>
    %12 = vector.broadcast %11 : vector<1x32xf32> to vector<8x32xf32>
    %13 = arith.addf %10, %12 : vector<8x32xf32>
    %cst_11 = arith.constant 0.000000e+00 : f32
    %14 = vector.broadcast %cst_11 : f32 to vector<8x32xf32>
    %15 = arith.maximumf %13, %14 : vector<8x32xf32>
    %16 = arith.truncf %15 : vector<8x32xf32> to vector<8x32xbf16>
    %c0_12 = arith.constant 0 : index
    %c0_13 = arith.constant 0 : index
    %17 = vector.load %arg6[%c0_12, %c0_13] : memref<32x8xbf16, #tpu.memory_space<vmem>>, vector<32x8xbf16>
    %cst_14 = arith.constant dense<0.000000e+00> : vector<8x8xf32>
    %18 = tpu.matmul %16, %17, %cst_14 {dimension_numbers = #tpu.dot_dimension_numbers<[1], [0], [0], [1], [0, 0, 1, 1], [], []>} : vector<8x32xbf16>, vector<32x8xbf16>, vector<8x8xf32> -> vector<8x8xf32>
    %c0_15 = arith.constant 0 : index
    %c0_16 = arith.constant 0 : index
    %19 = vector.load %arg7[%c0_15, %c0_16] : memref<1x8xf32, #tpu.memory_space<vmem>>, vector<1x8xf32>
    %20 = vector.broadcast %19 : vector<1x8xf32> to vector<8x8xf32>
    %21 = arith.addf %18, %20 : vector<8x8xf32>
    %cst_17 = arith.constant dense<0xFF800000> : vector<8xf32>
    %22 = vector.multi_reduction <maximumf>, %21, %cst_17 [1] : vector<8x8xf32> to vector<8xf32>
    %23 = vector.shape_cast %22 : vector<8xf32> to vector<8x1xf32>
    %24 = vector.broadcast %23 : vector<8x1xf32> to vector<8x8xf32>
    %25 = arith.subf %21, %24 : vector<8x8xf32>
    %26 = math.exp %25 : vector<8x8xf32>
    %cst_18 = arith.constant dense<0.000000e+00> : vector<8xf32>
    %27 = vector.multi_reduction <add>, %26, %cst_18 [1] : vector<8x8xf32> to vector<8xf32>
    %28 = vector.shape_cast %27 : vector<8xf32> to vector<8x1xf32>
    %29 = tpu.reciprocal %28 : vector<8x1xf32> -> vector<8x1xf32>
    %30 = vector.broadcast %29 : vector<8x1xf32> to vector<8x8xf32>
    %31 = arith.mulf %26, %30 : vector<8x8xf32>
    %c0_19 = arith.constant 0 : index
    %c0_20 = arith.constant 0 : index
    %32 = vector.load %arg8[%c0_19, %c0_20] : memref<8x8xf32, #tpu.memory_space<vmem>>, vector<8x8xf32>
    tpu.vector_store %arg8[%c0_19, %c0_20], %31 {strides = array<i32>} : memref<8x8xf32, #tpu.memory_space<vmem>>, vector<8x8xf32>,
    return
  }
  func.func @transform_0(%arg0: i32) -> (i32, i32) {
    %c0_i32 = arith.constant 0 : i32
    %c0_i32_0 = arith.constant 0 : i32
    return %arg0, %c0_i32 : i32, i32
  }
  func.func @transform_1(%arg0: i32) -> (i32, i32) {
    %c0_i32 = arith.constant 0 : i32
    %c0_i32_0 = arith.constant 0 : i32
    %c0_i32_1 = arith.constant 0 : i32
    return %c0_i32, %c0_i32_0 : i32, i32
  }
  func.func @transform_2(%arg0: i32) -> (i32, i32) {
    %c0_i32 = arith.constant 0 : i32
    %c0_i32_0 = arith.constant 0 : i32
    %c0_i32_1 = arith.constant 0 : i32
    return %c0_i32, %c0_i32_0 : i32, i32
  }
  func.func @transform_3(%arg0: i32) -> (i32, i32) {
    %c0_i32 = arith.constant 0 : i32
    %c0_i32_0 = arith.constant 0 : i32
    %c0_i32_1 = arith.constant 0 : i32
    return %c0_i32, %c0_i32_0 : i32, i32
  }
  func.func @transform_4(%arg0: i32) -> (i32, i32) {
    %c0_i32 = arith.constant 0 : i32
    %c0_i32_0 = arith.constant 0 : i32
    %c0_i32_1 = arith.constant 0 : i32
    return %c0_i32, %c0_i32_0 : i32, i32
  }
  func.func @transform_5(%arg0: i32) -> (i32, i32) {
    %c0_i32 = arith.constant 0 : i32
    %c0_i32_0 = arith.constant 0 : i32
    %c0_i32_1 = arith.constant 0 : i32
    return %c0_i32, %c0_i32_0 : i32, i32
  }
  func.func @transform_6(%arg0: i32) -> (i32, i32) {
    %c0_i32 = arith.constant 0 : i32
    %c0_i32_0 = arith.constant 0 : i32
    %c0_i32_1 = arith.constant 0 : i32
    return %c0_i32, %c0_i32_0 : i32, i32
  }
  func.func @transform_7(%arg0: i32) -> (i32, i32) {
    %c0_i32 = arith.constant 0 : i32
    %c0_i32_0 = arith.constant 0 : i32
    return %arg0, %c0_i32 : i32, i32
  }
}

</mosaic_0001>

<bundles_post_ra>
// kernel: tpu_custom_call.1
= control target key start
LH: loop header
LB: loop body
LE: loop exit
PB: predicated region body
PF: predicated region fallthrough
CT: control target
= control target key end

     0   :  { %12 = vsyncpa [#allocation3], 0  ;;  %s477_s0 = inlined_call_operand.hbm [shape: bf16[8,16], index: 0, kind: input, shape index: {}]   ;;  %s478_s1 = inlined_call_operand.vmem [shape: bf16[16,32], index: 1, kind: input, shape index: {}]   ;;  %s479_s2 = inlined_call_operand.vmem [shape: f32[1,32], index: 2, kind: input, shape index: {}]   ;;  %s480_s3 = inlined_call_operand.vmem [shape: bf16[32,32], index: 3, kind: input, shape index: {}]   ;;  %s481_s4 = inlined_call_operand.hbm [shape: f32[1,32], index: 4, kind: input, shape index: {}]   ;;  %s482_s5 = inlined_call_operand.vmem [shape: bf16[32,8], index: 5, kind: input, shape index: {}]   ;;  %s483_s6 = inlined_call_operand.vmem [shape: f32[1,8], index: 6, kind: input, shape index: {}]   ;;  %s484_s7 = inlined_call_operand.hbm [shape: f32[8,8], index: 7, kind: output, shape index: {}]  }
   0x1   :  { %13 = vsyncpa [#allocation6], 0 }
   0x2   :  { %14 = vsyncpa [#allocation4], 0  ;;  %s399_s24 = smov [#allocation2]   ;;  %s400_s26 = smov [#allocation5]  }
   0x3   :  { %s21_s25 = sshll.u32 %s399_s24, 4  ;;  %s37_s27 = sshll.u32 %s400_s26, 4  ;;  %s22_s25 = int_to_ptr.vmem [resolvable:$true] %s21_s25  ;;  %s38_s27 = int_to_ptr.vmem [resolvable:$true] %s37_s27 }
   0x4   :  { %s341_s28 = scalar_lea.vmem %s22_s25, 64  ;;  %p346_p1 = scmp.lt.s32.totalorder %s22_s25, %s22_s25 }
   0x5   :  { %p342_p0 = scmp.ne.s32.totalorder %s22_s25, %s341_s28  ;;  %p347_p2 = scmp.lt.s32.totalorder %s341_s28, %s341_s28 }
   0x7   :  { %p348_p3 = por %p347_p2, %p346_p1 }
   0x9   :  { %p349_p4 = pnand %p348_p3, %p342_p0 }
   0xb   :  { %352 = shalt.err (!%p349_p4)
}
   0xc   :  { %24 = dma.hbm_to_vmem [thread:$0]  %s477_s0, 64, %s22_s25, [#allocation3]  }
   0xd   :  { %s361_s8 = scalar_lea.vmem %s38_s27, 16  ;;  %s365_s9 = scalar_lea.vmem %s38_s27, 32 }
   0xe   :  { %p362_p5 = scmp.ne.s32.totalorder %s38_s27, %s361_s8  ;;  %p366_p6 = scmp.lt.s32.totalorder %s38_s27, %s38_s27 }
   0xf   :  { %p367_p7 = scmp.lt.s32.totalorder %s365_s9, %s361_s8 }
  0x11   :  { %p368_p8 = por %p367_p7, %p366_p6 }
  0x13   :  { %p369_p9 = pnand %p368_p8, %p362_p5 }
  0x15   :  { %372 = shalt.err (!%p369_p9)
}
  0x16   :  { %40 = dma.hbm_to_vmem [thread:$0]  %s481_s4, 16, %s38_s27, [#allocation6]  }
  0x17   :  { %393 = dma.done.wait [#allocation3], 64  }
  0x18   :  { %394 = vsyncadd [#allocation3], 4294967232 }
  0x19   :  { %395 = dma.done.wait [#allocation6], 16  }
  0x1a   :  { %396 = vsyncadd [#allocation6], 4294967280  ;;  %v401_v0 = vmov 0.0   ;;  %vm402_vm0 = vmmov 0   ;;  %v324_v1 = vld [vmem:[%s478_s1] sm:$0xff]   ;;  %vm68_vm1 = vcmask 130048  }
  0x1b   :  { %297 = vmatprep.subr.bf16.mxu0 %v401_v0  ;;  %299 = vmatprep.mubr.msk.bf16.mxu0 %vm402_vm0, %v401_v0  ;;  %v52_v2 = vld [vmem:[#allocation2] sm:$0xf]  ;;  %v325_v3 = vld [vmem:[%s480_s3 + $0x8] sm:$0xff]   ;;  %vm137_vm2 = vcmask 261120   ;;  %v281_v15 = vld [vmem:[#allocation5] ss:$0 sm:$0xff] }
  0x1c   :  { %303 = vmatprep.subr.bf16.mxu1 %v401_v0  ;;  %307 = vmatprep.mubr.msk.bf16.mxu1 %vm402_vm0, %v401_v0  ;;  %v326_v4 = vld [vmem:[%s480_s3] sm:$0xff]   ;;  %v327_v5 = vld [vmem:[%s482_s5 + $0x8] sm:$0xff]   ;;  %vm249_vm3 = vcmask 64512  }
  0x1d   :  { %298 = vmatpush3.bf16.msra.mxu0 %v324_v1  ;;  %304 = vmatpush3.bf16.msra.mxu1 %v325_v3  ;;  %v278_v6 = vld [vmem:[%s479_s2] ss:$0 sm:$0xff] }
  0x1e   :  { %311 = vmatprep.subr.bf16.mxu0 %v401_v0  ;;  %305 = vmatprep.subr.bf16.mxu1 %v401_v0  ;;  %v328_v14 = vld [vmem:[%s482_s5] sm:$0xff]   ;;  %s403_s5 = smov [#allocation7]  }
  0x1f   :  { %v285_v23 = vld [vmem:[%s483_s6] ss:$0 sm:$0xff]  ;;  %s268_s6 = sshll.u32 %s403_s5, 4  ;;  %s269_s6 = int_to_ptr.vmem [resolvable:$true] %s268_s6 }
  0x20   :  { %300 = vmatmul.mubr.msk.bf16.vlgmr.msra.gmra.mxu0 %vm68_vm1, %v52_v2  ;;  %s373_s21 = scalar_lea.vmem %s269_s6, 128  ;;  %p378_p11 = scmp.lt.s32.totalorder %s269_s6, %s269_s6 }
  0x21   :  { %315 = vmatprep.mubr.msk.bf16.mxu0 %vm402_vm0, %v401_v0  ;;  %306 = vmatpush3.bf16.msra.mxu1 %v326_v4  ;;  %p374_p10 = scmp.ne.s32.totalorder %s269_s6, %s373_s21  ;;  %p379_p12 = scmp.lt.s32.totalorder %s373_s21, %s373_s21 }
  0x22   :  { %312 = vmatpush3.bf16.msra.mxu0 %v327_v5 }
  0x23   :  { %313 = vmatprep.subr.bf16.mxu0 %v401_v0  ;;  %p380_p13 = por %p379_p12, %p378_p11 }
  0x25   :  { %p381_p0 = pnand %p380_p13, %p374_p10 }
  0x26   :  { %314 = vmatpush3.bf16.msra.mxu0 %v328_v14 }
  0xe0   :  { %v106_v7 = vpop.f32.mrf.mxu0 }
  0xe1   :  { %v107_v8 = vadd.f32 %v278_v6, %v106_v7 }
  0xe2   :  { %v301_v9 = vpop.f32.mrf.mxu0 }
  0xe3   :  { %v112_v10 = vmax.f32 %v107_v8, 0.0 }
  0xe4   :  { %v109_v11 = vpop.f32.mrf.mxu0 }
  0xe5   :  { %v113_v12 = vpack.c.bf16 %v112_v10, %v112_v10 }
  0xe6   :  { %v302_v13 = vpop.f32.mrf.mxu0 }
  0xe7   :  { %308 = vmatmul.mubr.msk.bf16.vlgmr.msra.gmra.mxu1 %vm137_vm2, %v113_v12 }
 0x1a7   :  { %v175_v16 = vpop.f32.mrf.mxu1 }
 0x1a8   :  { %v176_v17 = vadd.f32 %v281_v15, %v175_v16 }
 0x1a9   :  { %v309_v18 = vpop.f32.mrf.mxu1 }
 0x1aa   :  { %v181_v19 = vmax.f32 %v176_v17, 0.0 }
 0x1ab   :  { %v178_v20 = vpop.f32.mrf.mxu1 }
 0x1ac   :  { %v182_v21 = vpack.c.bf16 %v181_v19, %v181_v19 }
 0x1ad   :  { %v310_v22 = vpop.f32.mrf.mxu1 }
 0x1ae   :  { %316 = vmatmul.mubr.msk.bf16.vlgmr.msra.gmra.mxu0 %vm137_vm2, %v182_v21 }
 0x26e   :  { %v243_v24 = vpop.f32.mrf.mxu0 }
 0x26f   :  { %v244_v25 = vadd.f32 %v285_v23, %v243_v24 }
 0x270   :  { %v317_v26 = vpop.f32.mrf.mxu0 }
 0x271   :  { %v250_v27 = vsel %vm249_vm3, %v244_v25, -inf }
 0x272   :  { %251 = vmax.xlane.f32.xlu0 %v250_v27  ;;  %v246_v28 = vpop.f32.mrf.mxu0 }
 0x274   :  { %v318_v29 = vpop.f32.mrf.mxu0 }
 0x2fb   :  { %v252_v30 = vpop.xlane.xlu0 %251 }
 0x2fc   :  { %v253_v31 = vsub.f32 %v244_v25, %v252_v30 }
 0x2fe   :  { %v254_v32 = vmul.f32 1.442695, %v253_v31 }
 0x300   :  { %329 = vpow2.f32 %v254_v32 }
 0x30d   :  { %v330_v33 = vpop.eup %329 }
 0x30e   :  { %v256_v34 = vsel %vm249_vm3, %v330_v33, 0.0 }
 0x30f   :  { %257 = vadd.xlane.f32.xlu0 %v256_v34 }
 0x398   :  { %v258_v35 = vpop.xlane.xlu0 %257 }
 0x399   :  { %331 = vrcp.f32 %v258_v35 }
 0x3a6   :  { %v332_v36 = vpop.eup %331 }
 0x3a7   :  { %v260_v37 = vmul.f32 %v332_v36, %v330_v33 }
 0x3a9   :  { %261 = vst.msk [vmem:[#allocation7] sm:$0xff] %vm249_vm3, %v260_v37 }
 0x3aa   :  { %384 = shalt.err (!%p381_p0)
}
 0x3ab   :  { %271 = dma.vmem_to_hbm [thread:$0]  %s269_s6, 128, %s484_s7, [#allocation4]  }
 0x3ac   :  { %397 = dma.done.wait [#allocation4], 128  }
 0x3ad   :  { %398 = vsyncadd [#allocation4], 4294967168 }
 0x3ae   :  { %275 = vsyncpa [#allocation3], 1 }
 0x3af   :  { %276 = vsyncpa [#allocation6], 1 }
 0x3b0   :  { %277 = vsyncpa [#allocation4], 1 }

</bundles_post_ra>
